<compile_context>
chip_gen: v6e
topology: v6e:2x2x1
jax: 0.10.0
libtpu: 0.0.40
codegen_flags: <defaults>
</compile_context>

<pallas_src>
import jax
import jax.numpy as jnp
from jax.experimental import pallas as pl
from jax.experimental.pallas import tpu as pltpu


def _round_up(x, m):
    return ((x + m - 1) // m) * m


def lm_head_kernel(pooled_ref, w_ref, out_ref):
    """One (vocab tile, batch tile) of logits = pooled @ W_tile.

    pooled_ref : [bm, D]     (weight dtype, bf16)  pooled decoder hidden state
    w_ref      : [1, D, tv]  (weight dtype)        contiguous lm_head weight tile
    out_ref    : [bm, tv]    (out dtype)           logits tile
    """
    acc = jnp.dot(pooled_ref[...], w_ref[0],
                  preferred_element_type=jnp.float32)
    out_ref[...] = acc.astype(out_ref.dtype)


def choose_vocab_tile(V, *, tv_max=2048):
    """Pick a lane-dense vocab tile (multiple of 128).

    Prefers large tiles (fewer grid steps, line-rate DMAs, lane-dense stores)
    but keeps >= 2 vocab tiles when V allows so the 'parallel' vocab grid axis
    can shard across the two TensorCores on v7x.
    """
    tv = max(128, (min(tv_max, _round_up(V, 128)) // 128) * 128)
    if V > 256 and _round_up(V, tv) // tv < 2:
        tv = max(128, _round_up((V + 1) // 2, 128))
    return tv


def prepare_lm_head(w_t, *, tv, dtype=jnp.bfloat16):
    """Pad the vocab dim to a multiple of tv and re-layout tile-major.

    w_t : [D, V]  (nn.Linear(D, V, bias=False).weight, transposed)
    returns (w_tiles [V_pad//tv, D, tv], V_pad)

    Done ONCE at init so every per-step weight DMA is a single contiguous
    D*tv*itemsize transfer instead of D strided row reads.
    """
    D, V = w_t.shape
    V_pad = _round_up(V, tv)
    w = w_t.astype(dtype)
    if V_pad != V:
        w = jnp.pad(w, ((0, 0), (0, V_pad - V)))
    w_tiles = w.reshape(D, V_pad // tv, tv).transpose(1, 0, 2)
    return w_tiles, V_pad


def monot5_project(pooled, w_tiles, *, out_dtype=jnp.bfloat16):
    """logits[B, V_pad] = pooled[B, D] @ W[D, V_pad] via Pallas.

    pooled  : [B, D]
    w_tiles : [nv, D, tv] tile-major lm_head weights (see prepare_lm_head)

    Grid is (vocab, batch) with vocab OUTERMOST: each weight tile's block
    index is constant across the inner batch axis, so Pallas streams every
    weight tile from HBM exactly once regardless of batch-tile count (the
    tiny pooled tile is what gets re-fetched instead).
    """
    nv, D, tv = w_tiles.shape
    B, D2 = pooled.shape
    assert D == D2
    V_pad = nv * tv

    # Batch padding: sublane multiple of 8; one batch tile for modest B, 128-
    # row tiles only for very large batches.
    B_pad = _round_up(B, 8)
    if B_pad > 512:
        bm = 128
        # TODO(synk): use a cdiv grid with a masked remainder tile instead of
        # padding very large, non-multiple-of-128 batches.
        B_pad = _round_up(B, bm)
    else:
        bm = B_pad
    if B_pad != B:
        pooled = jnp.pad(pooled, ((0, B_pad - B), (0, 0)))
    nb = B_pad // bm

    # Feed the MXU in the weight dtype (bf16 halves HBM bytes); accumulate f32.
    # TODO(synk): optional quantized weights (fp8 on v7x, int8 on v5e/v6e)
    # with a dequant scale on the f32 accumulator.
    pooled = pooled.astype(w_tiles.dtype)
    out_itemsize = jnp.dtype(out_dtype).itemsize

    cost = pl.CostEstimate(
        flops=2 * B_pad * D * V_pad,
        transcendentals=0,
        bytes_accessed=int(
            nv * B_pad * D * pooled.dtype.itemsize       # pooled per vocab tile
            + w_tiles.size * w_tiles.dtype.itemsize      # each W tile once
            + B_pad * V_pad * out_itemsize))             # logits written once

    # Double-buffered working set; keep comfortable headroom under the v7x
    # 64 MiB physical VMEM while raising the scoped default when useful.
    vmem_need = 2 * (bm * D * pooled.dtype.itemsize
                     + D * tv * w_tiles.dtype.itemsize
                     + bm * tv * out_itemsize)
    vmem_limit = int(min(max(2 * vmem_need, 32 * 1024 * 1024),
                         56 * 1024 * 1024))

    out = pl.pallas_call(
        lm_head_kernel,
        out_shape=jax.ShapeDtypeStruct((B_pad, V_pad), out_dtype),
        grid_spec=pltpu.PrefetchScalarGridSpec(
            num_scalar_prefetch=0,
            grid=(nv, nb),                                # vocab outermost
            in_specs=[
                pl.BlockSpec((bm, D), lambda j, i: (i, 0)),       # pooled tile
                pl.BlockSpec((1, D, tv), lambda j, i: (j, 0, 0)), # contiguous W tile
            ],
            out_specs=pl.BlockSpec((bm, tv), lambda j, i: (i, j)),
        ),
        compiler_params=pltpu.CompilerParams(
            dimension_semantics=("parallel", "parallel"),
            vmem_limit_bytes=vmem_limit),
        cost_estimate=cost,
    )(pooled, w_tiles)
    return out[:B]


def masked_mean_pool(emb, attention_mask):
    """Stub first-step decoder hidden state: mask-weighted mean of embeddings."""
    mask = attention_mask.astype(jnp.float32)                       # [B, S]
    denom = jnp.maximum(jnp.sum(mask, axis=1, keepdims=True), 1.0)  # no div-by-0
    return jnp.einsum("bs,bsd->bd", mask, emb) / denom              # [B, D] f32


class MonoT5Pallas:
    """Deterministic synthetic stand-in for MonoT5 (inference path only)."""

    def __init__(self, vocab_size=512, hidden_size=32,
                 token_false_id=2, token_true_id=3, seed=0,
                 weight_dtype=jnp.bfloat16, logits_dtype=jnp.bfloat16,
                 tv_max=2048):
        key = jax.random.PRNGKey(seed)
        k_emb, k_lm, k_score = jax.random.split(key, 3)
        self.vocab_size = vocab_size
        self.hidden_size = hidden_size
        self.token_false_id = token_false_id
        self.token_true_id = token_true_id
        self.logits_dtype = logits_dtype
        # Token embedding table (stub for the T5 shared embedding).
        self.embedding = jax.random.normal(
            k_emb, (vocab_size, hidden_size), jnp.float32) * 0.02
        # lm_head: nn.Linear(hidden, vocab, bias=False) weight is [V, D]; keep
        # the transposed [D, V] bf16 copy for reference checks and re-layout
        # it ONCE, vocab-padded + tile-major, for the kernel's weight stream.
        self.lm_head_w_t = (jax.random.normal(
            k_lm, (hidden_size, vocab_size), jnp.float32) * 0.02
        ).astype(weight_dtype)
        self.tv = choose_vocab_tile(vocab_size, tv_max=tv_max)
        self.lm_head_tiles, self.vocab_pad = prepare_lm_head(
            self.lm_head_w_t, tv=self.tv, dtype=weight_dtype)
        # scoring = nn.Linear(dim, 1) + sigmoid: defined in the reference
        # module's __init__ but never used in the inference forward path.
        self.scoring_w = jax.random.normal(
            k_score, (1, hidden_size), jnp.float32) * 0.02
        self.scoring_b = jnp.zeros((1,), jnp.float32)

    def forward(self, input_ids, attention_mask):
        # TODO(synk): the real T5 encoder-decoder generate() (self/cross
        # attention, relative position bias, KV cache) has no single-kernel
        # Pallas equivalent; the first-step decoder hidden state is
        # synthesized by a masked mean-pool of token embeddings instead.
        emb = jnp.take(self.embedding, input_ids, axis=0)      # [B, S, D]
        pooled = masked_mean_pool(emb, attention_mask)          # [B, D]  (once)
        # Full-vocab lm_head projection (the spec computes full logits and
        # then selects the true-token column).
        logits = monot5_project(pooled, self.lm_head_tiles,
                                out_dtype=self.logits_dtype)    # [B, V_pad]
        logits = logits[:, :self.vocab_size]   # drop vocab padding columns
        return logits[:, self.token_true_id].astype(jnp.float32)


if __name__ == "__main__":
    B, S = 2, 8
    model = MonoT5Pallas(vocab_size=512, hidden_size=32,
                         token_false_id=2, token_true_id=3, seed=0)

    key = jax.random.PRNGKey(0)
    k_ids, _ = jax.random.split(key)
    input_ids = jax.random.randint(k_ids, (B, S), 0, model.vocab_size,
                                   dtype=jnp.int32)
    # Simple deterministic attention mask: first row full, second row half pad.
    attention_mask = jnp.array(
        [[1] * S, [1] * (S // 2) + [0] * (S - S // 2)], dtype=jnp.int32)

    scores = model.forward(input_ids, attention_mask)
    scores = jax.block_until_ready(scores)

    # Pure-JAX reference (same bf16 weights / bf16 pooled, f32 accumulation).
    emb = jnp.take(model.embedding, input_ids, axis=0)
    pooled = masked_mean_pool(emb, attention_mask)
    pooled_q = pooled.astype(jnp.bfloat16).astype(jnp.float32)
    w_f32 = model.lm_head_w_t.astype(jnp.float32)
    ref_full = pooled_q @ w_f32
    ref_scores = ref_full[:, model.token_true_id]
    assert scores.shape == (B,)
    assert jnp.allclose(scores, ref_scores, atol=1e-4, rtol=2e-2)

    # Also exercise the projection with f32 outputs against the reference.
    logits_full = monot5_project(pooled, model.lm_head_tiles,
                                 out_dtype=jnp.float32)
    logits_full = jax.block_until_ready(logits_full)
    assert logits_full.shape == (B, model.vocab_pad)
    assert jnp.allclose(logits_full[:, :model.vocab_size], ref_full,
                        atol=1e-4, rtol=1e-2)

    print("KERNEL_OK")
</pallas_src>

<mosaic_0001>
module attributes {stable_mosaic.version = 11 : i64} {
  func.func @lm_head_kernel(%arg0: i32, %arg1: i32, %arg2: memref<8x32xbf16, #tpu.memory_space<vmem>>, %arg3: memref<1x32x256xbf16, #tpu.memory_space<vmem>>, %arg4: memref<8x256xbf16, #tpu.memory_space<vmem>>) attributes {dimension_semantics = [#tpu.dimension_semantics<parallel>, #tpu.dimension_semantics<parallel>], iteration_bounds = array<i64: 2, 1>, scalar_prefetch = 0 : i64, scratch_operands = 0 : i64, tpu.core_type = #tpu.core_type<tc>, window_params = [{transform_indices = @transform_0, window_bounds = array<i64: 8, 32>}, {transform_indices = @transform_1, window_bounds = array<i64: 1, 32, 256>}, {transform_indices = @transform_2, window_bounds = array<i64: 8, 256>}]} {
    %c0 = arith.constant 0 : index
    %c0_0 = arith.constant 0 : index
    %0 = vector.load %arg2[%c0, %c0_0] : memref<8x32xbf16, #tpu.memory_space<vmem>>, vector<8x32xbf16>
    %c0_1 = arith.constant 0 : index
    %c0_2 = arith.constant 0 : index
    %c0_3 = arith.constant 0 : index
    %1 = vector.load %arg3[%c0_1, %c0_2, %c0_3] : memref<1x32x256xbf16, #tpu.memory_space<vmem>>, vector<1x32x256xbf16>
    %2 = vector.shape_cast %1 : vector<1x32x256xbf16> to vector<32x256xbf16>
    %cst = arith.constant dense<0.000000e+00> : vector<8x256xf32>
    %3 = tpu.matmul %0, %2, %cst {dimension_numbers = #tpu.dot_dimension_numbers<[1], [0], [0], [1], [0, 0, 1, 1], [], []>} : vector<8x32xbf16>, vector<32x256xbf16>, vector<8x256xf32> -> vector<8x256xf32>
    %4 = arith.truncf %3 : vector<8x256xf32> to vector<8x256xbf16>
    %c0_4 = arith.constant 0 : index
    %c0_5 = arith.constant 0 : index
    %5 = vector.load %arg4[%c0_4, %c0_5] : memref<8x256xbf16, #tpu.memory_space<vmem>>, vector<8x256xbf16>
    tpu.vector_store %arg4[%c0_4, %c0_5], %4 {strides = array<i32>} : memref<8x256xbf16, #tpu.memory_space<vmem>>, vector<8x256xbf16>,
    return
  }
  func.func @transform_0(%arg0: i32, %arg1: i32) -> (i32, i32) {
    %c0_i32 = arith.constant 0 : i32
    %c0_i32_0 = arith.constant 0 : i32
    return %arg1, %c0_i32 : i32, i32
  }
  func.func @transform_1(%arg0: i32, %arg1: i32) -> (i32, i32, i32) {
    %c0_i32 = arith.constant 0 : i32
    %c0_i32_0 = arith.constant 0 : i32
    %c0_i32_1 = arith.constant 0 : i32
    return %arg0, %c0_i32, %c0_i32_0 : i32, i32, i32
  }
  func.func @transform_2(%arg0: i32, %arg1: i32) -> (i32, i32) {
    %c0_i32 = arith.constant 0 : i32
    return %arg1, %arg0 : i32, i32
  }
}

</mosaic_0001>

<bundles_post_ra>
// kernel: tpu_custom_call.1
= control target key start
LH: loop header
LB: loop body
LE: loop exit
PB: predicated region body
PF: predicated region fallthrough
CT: control target
= control target key end

     0   :  { %7 = vsyncpa [#allocation3], 0  ;;  %s834_s0 = inlined_call_operand.hbm [shape: bf16[8,32], index: 0, kind: input, shape index: {}]   ;;  %s835_s1 = inlined_call_operand.hbm [shape: bf16[2,32,256], index: 1, kind: input, shape index: {}]   ;;  %s836_s2 = inlined_call_operand.hbm [shape: bf16[8,512], index: 2, kind: output, shape index: {}]  }
   0x1   :  { %8 = vsyncpa [#allocation6], 0 }
   0x2   :  { %10 = vsyncpa [#allocation6 + $0x1], 0 }
   0x3   :  { %11 = vsyncpa [#allocation4], 0 }
   0x4   :  { %13 = vsyncpa [#allocation4 + $0x1], 0  ;;  %s658_s9 = smov 0   ;;  %s660_s10 = smov 0  }
   0x5   :  { %s662_s11 = smov 0   ;;  %s664_s12 = smov 0  }
   0x6   :  { %s666_s13 = smov 0   ;;  %s668_s14 = smov 0  }
   0x7 LB: > { %s389_s15 = sadd.s32 4294967295, %s635_s14   ;;  %s390_s16 = sadd.s32 4294967294, %s635_s14   ;;  %s635_s14 = sphi %s668_s14, %s19_s14   ;;  %s631_s13 = sphi %s666_s13, %s855_s13   ;;  %s627_s12 = sphi %s664_s12, %s854_s12   ;;  %s623_s11 = sphi %s662_s11, %s853_s11   ;;  %s619_s10 = sphi %s660_s10, %s852_s10   ;;  %s615_s9 = sphi %s658_s9, %s851_s9  }
   0x8   : > { %s64_s17 = sadd.s32 1, %s623_s11  ;;  %p71_p0 = scmp.ne.s32.totalorder %s623_s11, %s619_s10 }
   0x9   : > { %p72_p1 = scmp.eq.s32.totalorder %s635_s14, 0  ;;  %p77_p2 = scmp.ne.s32.totalorder %s619_s10, %s615_s9 }
   0xa   : > { %p696_p3 = scmp.eq.s32.totalorder %s389_s15, 0  ;;  %p103_p4 = scmp.eq.s32.totalorder %s389_s15, 1 }
   0xb   : > { %p700_p5 = por %p72_p1, %p71_p0  ;;  %p109_p6 = scmp.eq.s32.totalorder %s390_s16, 1 }
   0xc   : > { %p706_p7 = por %p696_p3, %p77_p2  ;;  %p710_p8 = por %p103_p4, %p71_p0 }
   0xd   : > { %p714_p9 = por %p109_p6, %p77_p2  ;;  %p391_p10 = scmp.ge.s32.totalorder %s635_s14, 1 }
   0xe   : > { %s841_s20 = scalar_select %p706_p7, 1, 0 }
   0xf   : > { %s842_s21 = scalar_select %p710_p8, 1, 0 }
  0x10   : > { %s843_s22 = scalar_select %p714_p9, 1, 0 }
  0x11   : > { %p116_p11 = scmp.lt.s32.totalorder %s635_s14, 3  ;;  %s637_s24 = smov [#allocation2]  }
  0x12   : > { %s131_s25 = sshll.u32 %s637_s24, 4  ;;  %p436_p1 = scmp.lt.s32.totalorder %s635_s14, 2  ;;  %s132_s25 = int_to_ptr.vmem [resolvable:$true] %s131_s25 }
  0x13   : > { %p721_p13 = pnand %p391_p10, %p116_p11  ;;  %s31_s28 = sadd.s32 1, %s631_s13 }
  0x14   : > { %p730_p4 = pnand %p436_p1, %p700_p5  ;;  %p33_p6 = scmp.ge.s32.totalorder %s31_s28, 2 }
  0x15   : > { %p423_p0 = pneg %p721_p13  ;;  %s142_s29 = sand.u32 1, %s623_s11  }
  0x16   : > { %s508_s30 = scalar_lea.vmem %s132_s25, 64  ;;  %p516_p8 = scmp.lt.s32.totalorder %s132_s25, %s132_s25 }
  0x17   : > { %p736_p2 = pnand %p423_p0, %p696_p3  ;;  %p509_p11 = scmp.ne.s32.totalorder %s132_s25, %s508_s30 }
  0x18   : > { %p517_p5 = scmp.lt.s32.totalorder %s508_s30, %s508_s30 }
  0x19   : > { %p499_p10 = pneg %p736_p2 }
  0x1a   : > { %p518_p1 = por %p517_p5, %p516_p8 }
  0x1b   : > { %p511_p12 = pnand %p509_p11, %p499_p10 }
  0x1d   : > { %p512_p9 = pneg %p511_p12 }
  0x1f   : > { %p519_p7 = pnand %p518_p1, %p512_p9 }
  0x21   : > { %522 = shalt.err (!%p519_p7)
}
  0x22   : > { %426 = dma.hbm_to_vmem [thread:$0]  (!%p736_p2), %s834_s0, 64, %s132_s25, [#allocation3]  }
  0x23   : > { %s857_s28 = smov (%p33_p6, %s31_s28), 0  ;;  %s394_s5 = sshll.u32 %s142_s29, 5 }
  0x24   : > { %s61_s6 = ssub.s32 %s631_s13, %s857_s28  ;;  %s412_s7 = sshll.u32 %s631_s13, 9 }
  0x25   : > { %p62_p12 = scmp.eq.s32.totalorder %s61_s6, 0  ;;  %s152_s16 = scalar_lea.hbm %s835_s1, %s412_s7 }
  0x26   : > { %s146_s19 = scalar_lea.vmem [#allocation5], %s394_s5  ;;  %s143_s30 = scalar_lea.sflag [#allocation6], %s142_s29 }
  0x27   : > { %s153_s24 = sshll.u32 %s146_s19, 4  ;;  %p525_p7 = pneg %p730_p4  ;;  %s154_s24 = int_to_ptr.vmem [resolvable:$true] %s153_s24 }
  0x28   : > { %s760_s27 = scalar_select %p62_p12, %s623_s11, %s64_s17  }
  0x29   : > { %s536_s25 = scalar_lea.vmem %s154_s24, 512  ;;  %s638_s3 = smov [#allocation5]  }
  0x2a   : > { %p537_p8 = scmp.ne.s32.totalorder %s154_s24, %s536_s25  ;;  %s541_s4 = sshll.u32 %s638_s3, 4  ;;  %s542_s4 = int_to_ptr.vmem [resolvable:$false] %s541_s4 }
  0x2b   : > { %s543_s6 = scalar_lea.vmem %s542_s4, 1024  ;;  %p544_p2 = scmp.lt.s32.totalorder %s154_s24, %s542_s4 }
  0x2c   : > { %p539_p9 = pnand %p537_p8, %p525_p7  ;;  %p545_p6 = scmp.lt.s32.totalorder %s543_s6, %s536_s25 }
  0x2e   : > { %p540_p0 = pneg %p539_p9  ;;  %p546_p10 = por %p545_p6, %p544_p2 }
  0x30   : > { %p547_p11 = pnand %p546_p10, %p540_p0 }
  0x32   : > { %550 = shalt.err (!%p547_p11)
}
  0x33   : > { %s639_s5 = smov 128   ;;  %s640_s17 = smov 8  }
  0x34   : > { %430 = dma.hbm_to_vmem [thread:$0]  (!%p730_p4), %s152_s16, 512, %s154_s24, %s143_s30, %s639_s5, %s639_s5, %s640_s17  }
  0x35   : > { %165 = sbr.rel (%p721_p13) target bundleno = 283 (0x11b), region = 28 }
  0x3a   : > { %602 = dma.done.wait (%p696_p3), [#allocation3], 64  }
  0x3b   : > { %604 = vsyncadd (%p696_p3), [#allocation3], 4294967232  ;;  %s773_s29 = sand.u32 1, %s619_s10   ;;  %p847_p5 = scmp.ne.s32.totalorder %s841_s20, 0 }
  0x3c   : > { %s399_s7 = sshll.u32 %s773_s29, 5  ;;  %s172_s8 = scalar_lea.sflag [#allocation6], %s773_s29 }
  0x3d   : > { %s175_s15 = scalar_lea.vmem [#allocation5], %s399_s7 }
  0x3e   : > { %606 = dma.done.wait (%p847_p5), %s172_s8, 512  }
  0x3f   : > { %608 = vsyncadd (%p847_p5), %s172_s8, 4294966784  ;;  %v641_v0 = vmov 0   ;;  %v491_v1 = vld [vmem:[%s175_s15 + $0x14] ss:$8 sps:$4 sm:$0xff]   ;;  %v493_v2 = vld [vmem:[%s175_s15 + $0x10] ss:$8 sps:$4 sm:$0xff]  }
  0x40   : > { %259 = vmatprep.mubr.bf16.mxu0 %v641_v0  ;;  %239 = vmatprep.subr.bf16.mxu0 %v491_v1  ;;  %v494_v3 = vld [vmem:[%s175_s15 + $0x4] ss:$8 sps:$4 sm:$0xff]   ;;  %v496_v4 = vld [vmem:[%s175_s15] ss:$8 sps:$4 sm:$0xff]   ;;  %v198_v5 = vld [vmem:[#allocation2] sm:$0xf] }
  0x41   : > { %240 = vmatpush1.bf16.msra.mxu0 %v493_v2  ;;  %vm223_vm0 = vcmask 261120   ;;  %s400_s18 = sshll.u32 %s773_s29, 3  ;;  %s414_s20 = sshll.u32 %s627_s12, 7 }
  0x42   : > { %241 = vmatprep.subr.bf16.mxu0 %v494_v3  ;;  %s195_s23 = scalar_lea.vmem [#allocation7], %s400_s18  ;;  %s786_s24 = scalar_lea.hbm %s836_s2, %s414_s20 }
  0x43   : > { %s294_s26 = sshll.u32 %s195_s23, 4  ;;  %s278_s30 = scalar_lea.sflag [#allocation4], %s773_s29  ;;  %s788_s26 = int_to_ptr.vmem [resolvable:$true] %s294_s26 }
  0x44   : > { %s551_s25 = scalar_lea.vmem %s788_s26, 128  ;;  %p848_p13 = scmp.ne.s32.totalorder %s842_s21, 0 }
  0x45   : > { %242 = vmatpush1.bf16.msra.mxu0 %v496_v4  ;;  %p552_p3 = scmp.ne.s32.totalorder %s788_s26, %s551_s25  ;;  %s642_s12 = smov [#allocation7]  }
  0x46   : > { %s555_s3 = sshll.u32 %s642_s12, 4  ;;  %s556_s3 = int_to_ptr.vmem [resolvable:$false] %s555_s3 }
  0x47   : > { %p553_p4 = pnand %p552_p3, %p848_p13  ;;  %s557_s4 = scalar_lea.vmem %s556_s3, 256 }
  0x48   : > { %405 = vmatmul.mubr.msk.bf16.vlgmr.msra.gmra.mxu0 %vm223_vm0, %v198_v5  ;;  %p558_p12 = scmp.lt.s32.totalorder %s788_s26, %s556_s3  ;;  %p559_p7 = scmp.lt.s32.totalorder %s557_s4, %s551_s25 }
  0x49   : > { %p554_p1 = pneg %p553_p4 }
  0x4a   : > { %p560_p8 = por %p559_p7, %p558_p12 }
  0x4c   : > { %p561_p9 = pnand %p560_p8, %p554_p1 }
 0x108   : > { %v261_v6 = vpop.f32.mrf.mxu0 }
 0x10a   : > { %v263_v7 = vpop.f32.mrf.mxu0 }
 0x10b   : > { %v413_v8 = vpack.c.bf16 %v263_v7, %v261_v6 }
 0x10c   : > { %v265_v9 = vpop.f32.mrf.mxu0 }
 0x10d   : > { %276 = vst [vmem:[%s195_s23] sm:$0xff] %v413_v8 }
 0x10e   : > { %v266_v10 = vpop.f32.mrf.mxu0 }
 0x10f   : > { %564 = shalt.err (!%p561_p9)
}
 0x110   : > { %s565_s6 = scalar_lea.hbm %s786_s24, 128  ;;  %s569_s29 = scalar_lea.hbm %s836_s2, 256 }
 0x111   : > { %p566_p0 = scmp.ne.s32.totalorder %s786_s24, %s565_s6  ;;  %p570_p10 = scmp.lt.s32.totalorder %s786_s24, %s836_s2 }
 0x112   : > { %p571_p11 = scmp.lt.s32.totalorder %s569_s29, %s565_s6 }
 0x113   : > { %p567_p2 = pnand %p566_p0, %p848_p13 }
 0x114   : > { %p572_p5 = por %p571_p11, %p570_p10 }
 0x115   : > { %p568_p6 = pneg %p567_p2 }
 0x117   : > { %p573_p3 = pnand %p572_p5, %p568_p6 }
 0x119   : > { %576 = shalt.err (!%p573_p3)
}
 0x11a   : > { %421 = dma.vmem_to_hbm [thread:$0]  (%p848_p13), %s788_s26, 128, %s786_s24, %s278_s30  }
 0x11b PF: > { %s306_s15 = sand.u32 1, %s615_s9   ;;  %p849_p4 = scmp.ne.s32.totalorder %s843_s22, 0 }
 0x11c   : > { %p850_p1 = scmp.ge.s32.totalorder %s635_s14, 2  ;;  %s307_s18 = scalar_lea.sflag [#allocation4], %s306_s15 }
 0x11e   : > { %p432_p12 = pnand %p850_p1, %p849_p4 }
 0x120   : > { %p433_p7 = pneg %p432_p12 }
 0x122   : > { %610 = dma.done.wait (%p433_p7), %s307_s18, 128  }
 0x123   : > { %612 = vsyncadd (%p433_p7), %s307_s18, 4294967168  ;;  %s19_s14 = sadd.s32 1, %s635_s14   ;;  %s851_s9 = smov %s619_s10 }
 0x124   : > { %p16_p8 = scmp.ge.s32.totalorder %s19_s14, 4   ;;  %s852_s10 = smov %s623_s11 }
 0x125   : > { %s853_s11 = smov %s760_s27  ;;  %s854_s12 = smov %s631_s13 }
 0x126   : > { %s855_s13 = smov %s857_s28  ;;  %18 = sbr.rel (!%p16_p8) target bundleno = 7 (0x7), region = 79 }
 0x12b   :  { %312 = vsyncpa [#allocation3], 1 }
 0x12c   :  { %314 = vsyncpa [#allocation3 + $0x1], 1 }
 0x12d   :  { %315 = vsyncpa [#allocation6], 1 }
 0x12e   :  { %317 = vsyncpa [#allocation6 + $0x1], 1 }
 0x12f   :  { %318 = vsyncpa [#allocation4], 1 }
 0x130   :  { %320 = vsyncpa [#allocation4 + $0x1], 1 }

</bundles_post_ra>
